<compile_context>
chip_gen: v7x
topology: tpu7x:2x2x1
jax: 0.10.0
libtpu: 0.0.40
codegen_flags: <defaults>
</compile_context>

<pallas_src>
import functools

import jax
import jax.numpy as jnp
from jax.experimental import pallas as pl
from jax.experimental.pallas import tpu as pltpu


# Target batch tile for the gridded path (multiple of 8 for f32 sublanes; big enough that
# per-step fixed cost (~0.35 us) is amortized at these tiny feature widths).
_TILE_B = 128


def mlp_kernel(x_ref, w1_ref, b1_ref, w2_ref, b2_ref, o_ref):
    # Cast the activation to the weight compute dtype on the VPU (in-kernel, so the
    # wrapper never emits a separate astype dispatch / extra HBM round trip).
    x = x_ref[...].astype(w1_ref.dtype)
    # Layer 1: MXU matmul with f32 accumulation, bias + ReLU on the f32 accumulator.
    h = jnp.dot(x, w1_ref[...], preferred_element_type=jnp.float32)
    h = jnp.maximum(h + b1_ref[...], 0.0)
    # Layer 2: cast activations back to the compute dtype (no-op for f32) and matmul.
    y = jnp.dot(h.astype(w2_ref.dtype), w2_ref[...],
                preferred_element_type=jnp.float32)
    o_ref[...] = jnp.maximum(y + b2_ref[...], 0.0).astype(o_ref.dtype)


def prepare_params(w1, b1, w2, b2, compute_dtype=jnp.bfloat16):
    """One-time (outside the jitted forward) cast of matmul weights to the MXU dtype.

    Biases stay f32: they are added to the f32 accumulator post-matmul.
    Pass compute_dtype=jnp.float32 for exact-f32 semantics.
    """
    return (w1.astype(compute_dtype), b1.astype(jnp.float32),
            w2.astype(compute_dtype), b2.astype(jnp.float32))


def _batch_tile(B):
    """Largest batch tile <= _TILE_B that is a multiple of 8 and divides B."""
    for t in range(_TILE_B, 7, -8):
        if B % t == 0:
            return t
    return None


@jax.jit
def fashion_mnist_model_v1(x, w1, b1, w2, b2):
    """Forward pass of FashionMNISTModelV1.

    x:  [B, C, H, W] float32 (NCHW, as in PyTorch)
    w1: [D, Hid] (f32 or bf16 — see prepare_params)   b1: [Hid]
    w2: [Hid, O] (f32 or bf16)                          b2: [O]
    returns: [B, O] float32
    """
    B = x.shape[0]
    D, HID = w1.shape
    O = w2.shape[1]

    x_flat = x.reshape(B, D)                 # nn.Flatten()
    b1_2d = b1.reshape(1, HID).astype(jnp.float32)
    b2_2d = b2.reshape(1, O).astype(jnp.float32)

    cost = pl.CostEstimate(
        flops=2 * B * (D * HID + HID * O),
        transcendentals=0,
        bytes_accessed=(x_flat.size * x_flat.dtype.itemsize
                        + w1.size * w1.dtype.itemsize + b1_2d.size * 4
                        + w2.size * w2.dtype.itemsize + b2_2d.size * 4
                        + B * O * 4),
    )
    out_shape = jax.ShapeDtypeStruct((B, O), jnp.float32)

    tile_b = None if B <= _TILE_B else _batch_tile(B)

    if tile_b is None:
        # Small (or awkwardly-sized) batch: single invocation, whole-array VMEM blocks.
        # The entire working set is <1 MiB, far under VMEM on v5e/v6e/v7x; a 1-step grid
        # here would be pure overhead.
        vmem = pltpu.MemorySpace.VMEM
        return pl.pallas_call(
            mlp_kernel,
            out_shape=out_shape,
            in_specs=[pl.BlockSpec(memory_space=vmem)] * 5,
            out_specs=pl.BlockSpec(memory_space=vmem),
            cost_estimate=cost,
        )(x_flat, w1, b1_2d, w2, b2_2d)

    # Larger batch: tile the batch axis so the activation DMA is double-buffered and the
    # per-invocation fixed cost is amortized. Weights/biases are grid-invariant blocks
    # (constant index_map -> resident in VMEM, no re-fetch). The batch axis is "parallel"
    # so tiles shard across v7x's 2 TensorCores; neutral on v5e/v6e.
    grid = (B // tile_b,)
    return pl.pallas_call(
        mlp_kernel,
        out_shape=out_shape,
        grid_spec=pltpu.PrefetchScalarGridSpec(
            num_scalar_prefetch=0,
            grid=grid,
            in_specs=[
                pl.BlockSpec((tile_b, D), lambda i: (i, 0)),   # x tile (pipelined)
                pl.BlockSpec((D, HID),    lambda i: (0, 0)),   # w1 (grid-invariant)
                pl.BlockSpec((1, HID),    lambda i: (0, 0)),   # b1
                pl.BlockSpec((HID, O),    lambda i: (0, 0)),   # w2
                pl.BlockSpec((1, O),      lambda i: (0, 0)),   # b2
            ],
            out_specs=pl.BlockSpec((tile_b, O), lambda i: (i, 0)),
        ),
        compiler_params=pltpu.CompilerParams(
            dimension_semantics=("parallel",),
        ),
        cost_estimate=cost,
    )(x_flat, w1, b1_2d, w2, b2_2d)


def init_params(key, input_shape, hidden_units, output_shape):
    """Deterministic init mimicking nn.Linear default (uniform +/- 1/sqrt(fan_in))."""
    k1, k2, k3, k4 = jax.random.split(key, 4)
    bound1 = 1.0 / jnp.sqrt(jnp.float32(input_shape))
    bound2 = 1.0 / jnp.sqrt(jnp.float32(hidden_units))
    w1 = jax.random.uniform(k1, (input_shape, hidden_units), jnp.float32, -bound1, bound1)
    b1 = jax.random.uniform(k2, (hidden_units,), jnp.float32, -bound1, bound1)
    w2 = jax.random.uniform(k3, (hidden_units, output_shape), jnp.float32, -bound2, bound2)
    b2 = jax.random.uniform(k4, (output_shape,), jnp.float32, -bound2, bound2)
    return w1, b1, w2, b2


if __name__ == "__main__":
    key = jax.random.PRNGKey(0)
    kx, kp, kx2 = jax.random.split(key, 3)

    # FashionMNIST-like: 1x28x28 images, hidden=32, 10 classes.
    C, H, W = 1, 28, 28
    D = C * H * W
    HID, OUT = 32, 10

    w1, b1, w2, b2 = init_params(kp, D, HID, OUT)
    # One-time bf16 weight copies (outside the forward; used for the fast path).
    w1b, b1b, w2b, b2b = prepare_params(w1, b1, w2, b2, compute_dtype=jnp.bfloat16)

    def ref_fwd(x):
        return jnp.maximum(
            jnp.maximum(x.reshape(x.shape[0], D) @ w1 + b1, 0.0) @ w2 + b2, 0.0
        )

    # --- Small batch (single-invocation path) -------------------------------------
    B = 8
    x = jax.random.normal(kx, (B, C, H, W), jnp.float32)
    ref = ref_fwd(x)

    # Exact-semantics path (f32 weights): tight tolerance.
    out_f32 = jax.block_until_ready(fashion_mnist_model_v1(x, w1, b1, w2, b2))
    assert out_f32.shape == (B, OUT)
    assert jnp.allclose(out_f32, ref, atol=1e-5, rtol=1e-5)

    # Fast path (bf16 weights cast once; f32 accumulation): loosened tolerance.
    out_bf16 = jax.block_until_ready(fashion_mnist_model_v1(x, w1b, b1b, w2b, b2b))
    assert out_bf16.shape == (B, OUT)
    assert jnp.allclose(out_bf16, ref, atol=1e-1, rtol=5e-2)

    # --- Larger batch (gridded, "parallel" path: 2 batch tiles of 128) ------------
    B2 = 256
    x2 = jax.random.normal(kx2, (B2, C, H, W), jnp.float32)
    ref2 = ref_fwd(x2)
    out2 = jax.block_until_ready(fashion_mnist_model_v1(x2, w1b, b1b, w2b, b2b))
    assert out2.shape == (B2, OUT)
    assert jnp.allclose(out2, ref2, atol=1e-1, rtol=5e-2)

    print("KERNEL_OK")
</pallas_src>

<mosaic_0001>
module attributes {stable_mosaic.version = 11 : i64} {
  func.func @mlp_kernel(%arg0: memref<8x784xf32, #tpu.memory_space<vmem>>, %arg1: memref<784x32xf32, #tpu.memory_space<vmem>>, %arg2: memref<1x32xf32, #tpu.memory_space<vmem>>, %arg3: memref<32x10xf32, #tpu.memory_space<vmem>>, %arg4: memref<1x10xf32, #tpu.memory_space<vmem>>, %arg5: memref<8x10xf32, #tpu.memory_space<vmem>>) attributes {dimension_semantics = [], scalar_prefetch = 0 : i64, scratch_operands = 0 : i64, tpu.core_type = #tpu.core_type<tc>} {
    %c0 = arith.constant 0 : index
    %c0_0 = arith.constant 0 : index
    %0 = vector.load %arg0[%c0, %c0_0] : memref<8x784xf32, #tpu.memory_space<vmem>>, vector<8x784xf32>
    %c0_1 = arith.constant 0 : index
    %c0_2 = arith.constant 0 : index
    %1 = vector.load %arg1[%c0_1, %c0_2] : memref<784x32xf32, #tpu.memory_space<vmem>>, vector<784x32xf32>
    %cst = arith.constant dense<0.000000e+00> : vector<8x32xf32>
    %2 = tpu.matmul %0, %1, %cst {dimension_numbers = #tpu.dot_dimension_numbers<[1], [0], [0], [1], [0, 0, 1, 1], [], []>} : vector<8x784xf32>, vector<784x32xf32>, vector<8x32xf32> -> vector<8x32xf32>
    %c0_3 = arith.constant 0 : index
    %c0_4 = arith.constant 0 : index
    %3 = vector.load %arg2[%c0_3, %c0_4] : memref<1x32xf32, #tpu.memory_space<vmem>>, vector<1x32xf32>
    %4 = vector.broadcast %3 : vector<1x32xf32> to vector<8x32xf32>
    %5 = arith.addf %2, %4 : vector<8x32xf32>
    %cst_5 = arith.constant 0.000000e+00 : f32
    %6 = vector.broadcast %cst_5 : f32 to vector<8x32xf32>
    %7 = arith.maximumf %5, %6 : vector<8x32xf32>
    %c0_6 = arith.constant 0 : index
    %c0_7 = arith.constant 0 : index
    %8 = vector.load %arg3[%c0_6, %c0_7] : memref<32x10xf32, #tpu.memory_space<vmem>>, vector<32x10xf32>
    %cst_8 = arith.constant dense<0.000000e+00> : vector<8x10xf32>
    %9 = tpu.matmul %7, %8, %cst_8 {dimension_numbers = #tpu.dot_dimension_numbers<[1], [0], [0], [1], [0, 0, 1, 1], [], []>} : vector<8x32xf32>, vector<32x10xf32>, vector<8x10xf32> -> vector<8x10xf32>
    %c0_9 = arith.constant 0 : index
    %c0_10 = arith.constant 0 : index
    %10 = vector.load %arg4[%c0_9, %c0_10] : memref<1x10xf32, #tpu.memory_space<vmem>>, vector<1x10xf32>
    %11 = vector.broadcast %10 : vector<1x10xf32> to vector<8x10xf32>
    %12 = arith.addf %9, %11 : vector<8x10xf32>
    %cst_11 = arith.constant 0.000000e+00 : f32
    %13 = vector.broadcast %cst_11 : f32 to vector<8x10xf32>
    %14 = arith.maximumf %12, %13 : vector<8x10xf32>
    %c0_12 = arith.constant 0 : index
    %c0_13 = arith.constant 0 : index
    %15 = vector.load %arg5[%c0_12, %c0_13] : memref<8x10xf32, #tpu.memory_space<vmem>>, vector<8x10xf32>
    tpu.vector_store %arg5[%c0_12, %c0_13], %14 {strides = array<i32>} : memref<8x10xf32, #tpu.memory_space<vmem>>, vector<8x10xf32>,
    return
  }
}

</mosaic_0001>

<bundles_post_ra>
// kernel: fashion_mnist_model_v1.1
= control target key start
LH: loop header
LB: loop body
LE: loop exit
PB: predicated region body
PF: predicated region fallthrough
CT: control target
= control target key end

     0   :  { %s1170_s0 = inlined_call_operand.vmem [shape: f32[8,784], index: 0, kind: input, shape index: {}]   ;;  %s1171_s1 = inlined_call_operand.vmem [shape: f32[784,32], index: 1, kind: input, shape index: {}]   ;;  %s1172_s2 = inlined_call_operand.vmem [shape: f32[1,32], index: 2, kind: input, shape index: {}]   ;;  %s1173_s3 = inlined_call_operand.vmem [shape: f32[32,10], index: 3, kind: input, shape index: {}]   ;;  %s1174_s4 = inlined_call_operand.vmem [shape: f32[1,10], index: 4, kind: input, shape index: {}]   ;;  %s1175_s5 = inlined_call_operand.hbm [shape: f32[8,10], index: 5, kind: output, shape index: {}]  }
   0x1   :  { %v44_v0 = vld [vmem:[%s1171_s1 + $0x80] sm:$0xff]  ;;  %v45_v1 = vld [vmem:[%s1171_s1 + $0x88] sm:$0xff]  ;;  %v46_v11 = vld [vmem:[%s1171_s1 + $0x90] sm:$0xff] }
   0x2   :  { %v28_v2 = vld [vmem:[%s1171_s1] sm:$0xff]  ;;  %v655_v3 = vpack.c.bf16 %v45_v1, %v44_v0  ;;  %v29_v4 = vld [vmem:[%s1171_s1 + $0x8] sm:$0xff]  ;;  %v47_v13 = vld [vmem:[%s1171_s1 + $0x98] sm:$0xff] }
   0x3   :  { %v76_v5 = vld [vmem:[%s1171_s1 + $0x180] sm:$0xff]  ;;  %v77_v6 = vld [vmem:[%s1171_s1 + $0x188] sm:$0xff]  ;;  %v657_v7 = vpack.c.bf16 %v29_v4, %v28_v2  ;;  %v30_v14 = vld [vmem:[%s1171_s1 + $0x10] sm:$0xff]  ;;  %v659_v16 = vpack.c.bf16 %v47_v13, %v46_v11 }
   0x4   :  { %v687_v8 = vpack.c.bf16 %v77_v6, %v76_v5  ;;  %v60_v9 = vld [vmem:[%s1171_s1 + $0x100] sm:$0xff]  ;;  %v61_v10 = vld [vmem:[%s1171_s1 + $0x108] sm:$0xff]  ;;  %656 = vmatprep.subr.bf16.mxu0 %v655_v3  ;;  %v31_v15 = vld [vmem:[%s1171_s1 + $0x18] sm:$0xff] }
   0x5   :  { %v689_v12 = vpack.c.bf16 %v61_v10, %v60_v9  ;;  %658 = vmatpush3.bf16.msra.mxu0 %v657_v7  ;;  %v661_v17 = vpack.c.bf16 %v31_v15, %v30_v14  ;;  %v78_v18 = vld [vmem:[%s1171_s1 + $0x190] sm:$0xff]  ;;  %v79_v19 = vld [vmem:[%s1171_s1 + $0x198] sm:$0xff]  ;;  %v48_v23 = vld [vmem:[%s1171_s1 + $0xa0] sm:$0xff] }
   0x6   :  { %688 = vmatprep.subr.bf16.mxu1 %v687_v8  ;;  %v62_v20 = vld [vmem:[%s1171_s1 + $0x110] sm:$0xff]  ;;  %v691_v21 = vpack.c.bf16 %v79_v19, %v78_v18  ;;  %v63_v22 = vld [vmem:[%s1171_s1 + $0x118] sm:$0xff]  ;;  %v49_v24 = vld [vmem:[%s1171_s1 + $0xa8] sm:$0xff]  ;;  %660 = vmatprep.subr.bf16.mxu0 %v659_v16 }
   0x7   :  { %690 = vmatpush3.bf16.msra.mxu1 %v689_v12  ;;  %v693_v25 = vpack.c.bf16 %v63_v22, %v62_v20  ;;  %v663_v26 = vpack.c.bf16 %v49_v24, %v48_v23  ;;  %v32_v27 = vld [vmem:[%s1171_s1 + $0x20] sm:$0xff]  ;;  %v33_v28 = vld [vmem:[%s1171_s1 + $0x28] sm:$0xff]  ;;  %v50_v35 = vld [vmem:[%s1171_s1 + $0xb0] sm:$0xff] }
   0x8   :  { %v80_v29 = vld [vmem:[%s1171_s1 + $0x1a0] sm:$0xff]  ;;  %692 = vmatprep.subr.bf16.mxu1 %v691_v21  ;;  %v81_v30 = vld [vmem:[%s1171_s1 + $0x1a8] sm:$0xff]  ;;  %v665_v33 = vpack.c.bf16 %v33_v28, %v32_v27  ;;  %v51_v36 = vld [vmem:[%s1171_s1 + $0xb8] sm:$0xff] }
   0x9   :  { %v64_v31 = vld [vmem:[%s1171_s1 + $0x120] sm:$0xff]  ;;  %v65_v32 = vld [vmem:[%s1171_s1 + $0x128] sm:$0xff]  ;;  %662 = vmatpush3.bf16.msra.mxu0 %v661_v17  ;;  %v695_v34 = vpack.c.bf16 %v81_v30, %v80_v29  ;;  %v34_v37 = vld [vmem:[%s1171_s1 + $0x30] sm:$0xff]  ;;  %v667_v39 = vpack.c.bf16 %v51_v36, %v50_v35 }
   0xa   :  { %664 = vmatprep.subr.bf16.mxu0 %v663_v26  ;;  %v697_v38 = vpack.c.bf16 %v65_v32, %v64_v31  ;;  %v35_v40 = vld [vmem:[%s1171_s1 + $0x38] sm:$0xff]  ;;  %v82_v41 = vld [vmem:[%s1171_s1 + $0x1b0] sm:$0xff]  ;;  %v52_v46 = vld [vmem:[%s1171_s1 + $0xc0] sm:$0xff] }
   0xb   :  { %694 = vmatpush3.bf16.msra.mxu1 %v693_v25  ;;  %v83_v42 = vld [vmem:[%s1171_s1 + $0x1b8] sm:$0xff]  ;;  %v66_v44 = vld [vmem:[%s1171_s1 + $0x130] sm:$0xff]  ;;  %v53_v47 = vld [vmem:[%s1171_s1 + $0xc8] sm:$0xff]  ;;  %v669_v48 = vpack.c.bf16 %v35_v40, %v34_v37 }
   0xc   :  { %696 = vmatprep.subr.bf16.mxu1 %v695_v34  ;;  %v699_v43 = vpack.c.bf16 %v83_v42, %v82_v41  ;;  %v67_v45 = vld [vmem:[%s1171_s1 + $0x138] sm:$0xff]  ;;  %v84_v49 = vld [vmem:[%s1171_s1 + $0x1c0] sm:$0xff]  ;;  %v85_v50 = vld [vmem:[%s1171_s1 + $0x1c8] sm:$0xff]  ;;  %v671_v52 = vpack.c.bf16 %v53_v47, %v52_v46 }
   0xd   :  { %666 = vmatpush3.bf16.msra.mxu0 %v665_v33  ;;  %v701_v51 = vpack.c.bf16 %v67_v45, %v66_v44  ;;  %v36_v53 = vld [vmem:[%s1171_s1 + $0x40] sm:$0xff]  ;;  %v37_v54 = vld [vmem:[%s1171_s1 + $0x48] sm:$0xff]  ;;  %v703_v56 = vpack.c.bf16 %v85_v50, %v84_v49  ;;  %v54_v58 = vld [vmem:[%s1171_s1 + $0xd0] sm:$0xff]  ;;  %v788_v50 = vmov 0.0|0.0  }
   0xe   :  { %668 = vmatprep.subr.bf16.mxu0 %v667_v39  ;;  %v68_v55 = vld [vmem:[%s1171_s1 + $0x140] sm:$0xff]  ;;  %v69_v57 = vld [vmem:[%s1171_s1 + $0x148] sm:$0xff]  ;;  %v55_v59 = vld [vmem:[%s1171_s1 + $0xd8] sm:$0xff]  ;;  %v673_v62 = vpack.c.bf16 %v37_v54, %v36_v53 }
   0xf   :  { %698 = vmatpush3.bf16.msra.mxu1 %v697_v38  ;;  %v86_v60 = vld [vmem:[%s1171_s1 + $0x1d0] sm:$0xff]  ;;  %v87_v61 = vld [vmem:[%s1171_s1 + $0x1d8] sm:$0xff]  ;;  %v705_v63 = vpack.c.bf16 %v69_v57, %v68_v55  ;;  %v675_v0 = vpack.c.bf16 %v55_v59, %v54_v58  ;;  %v56_v6 = vld [vmem:[%s1171_s1 + $0xe0] sm:$0xff] }
  0x10   :  { %700 = vmatprep.subr.bf16.mxu1 %v699_v43  ;;  %v38_v1 = vld [vmem:[%s1171_s1 + $0x50] sm:$0xff]  ;;  %v39_v2 = vld [vmem:[%s1171_s1 + $0x58] sm:$0xff]  ;;  %v707_v4 = vpack.c.bf16 %v87_v61, %v86_v60  ;;  %v57_v7 = vld [vmem:[%s1171_s1 + $0xe8] sm:$0xff] }
  0x11   :  { %670 = vmatpush3.bf16.msra.mxu0 %v669_v48  ;;  %v70_v3 = vld [vmem:[%s1171_s1 + $0x150] sm:$0xff]  ;;  %v71_v5 = vld [vmem:[%s1171_s1 + $0x158] sm:$0xff]  ;;  %v88_v8 = vld [vmem:[%s1171_s1 + $0x1e0] sm:$0xff]  ;;  %v677_v10 = vpack.c.bf16 %v39_v2, %v38_v1  ;;  %v679_v14 = vpack.c.bf16 %v57_v7, %v56_v6 }
  0x12   :  { %672 = vmatprep.subr.bf16.mxu0 %v671_v52  ;;  %v89_v9 = vld [vmem:[%s1171_s1 + $0x1e8] sm:$0xff]  ;;  %v40_v11 = vld [vmem:[%s1171_s1 + $0x60] sm:$0xff]  ;;  %v709_v13 = vpack.c.bf16 %v71_v5, %v70_v3  ;;  %v58_v19 = vld [vmem:[%s1171_s1 + $0xf0] sm:$0xff] }
  0x13   :  { %702 = vmatpush3.bf16.msra.mxu1 %v701_v51  ;;  %v22_v12 = vld [vmem:[%s1170_s0 + $0x8] sm:$0xff]  ;;  %v72_v16 = vld [vmem:[%s1171_s1 + $0x160] sm:$0xff]  ;;  %v711_v18 = vpack.c.bf16 %v89_v9, %v88_v8  ;;  %v59_v20 = vld [vmem:[%s1171_s1 + $0xf8] sm:$0xff] }
  0x14   :  { %704 = vmatprep.subr.bf16.mxu1 %v703_v56  ;;  %v41_v15 = vld [vmem:[%s1171_s1 + $0x68] sm:$0xff]  ;;  %201 = vmatprep.mubr.f32.mxu0 %v22_v12  ;;  %v24_v21 = vld [vmem:[%s1170_s0 + $0x18] sm:$0xff]  ;;  %v90_v22 = vld [vmem:[%s1171_s1 + $0x1f0] sm:$0xff]  ;;  %v683_v26 = vpack.c.bf16 %v59_v20, %v58_v19 }
  0x15   :  { %674 = vmatpush3.bf16.msra.mxu0 %v673_v62  ;;  %v73_v17 = vld [vmem:[%s1171_s1 + $0x168] sm:$0xff]  ;;  %v91_v23 = vld [vmem:[%s1171_s1 + $0x1f8] sm:$0xff]  ;;  %271 = vmatprep.mubr.f32.mxu1 %v24_v21  ;;  %v681_v24 = vpack.c.bf16 %v41_v15, %v40_v11  ;;  %v42_v27 = vld [vmem:[%s1171_s1 + $0x70] sm:$0xff] }
  0x16   :  { %676 = vmatprep.subr.bf16.mxu0 %v675_v0  ;;  %v713_v25 = vpack.c.bf16 %v73_v17, %v72_v16  ;;  %v43_v28 = vld [vmem:[%s1171_s1 + $0x78] sm:$0xff]  ;;  %v74_v29 = vld [vmem:[%s1171_s1 + $0x170] sm:$0xff]  ;;  %v715_v30 = vpack.c.bf16 %v91_v23, %v90_v22  ;;  %v108_v32 = vld [vmem:[%s1171_s1 + $0x280] sm:$0xff] }
  0x17   :  { %706 = vmatpush3.bf16.msra.mxu1 %v705_v63  ;;  %v75_v31 = vld [vmem:[%s1171_s1 + $0x178] sm:$0xff]  ;;  %v109_v33 = vld [vmem:[%s1171_s1 + $0x288] sm:$0xff]  ;;  %v685_v34 = vpack.c.bf16 %v43_v28, %v42_v27  ;;  %v92_v37 = vld [vmem:[%s1171_s1 + $0x200] sm:$0xff] }
  0x18   :  { %708 = vmatprep.subr.bf16.mxu1 %v707_v4  ;;  %v717_v35 = vpack.c.bf16 %v75_v31, %v74_v29  ;;  %v719_v36 = vpack.c.bf16 %v109_v33, %v108_v32  ;;  %v93_v38 = vld [vmem:[%s1171_s1 + $0x208] sm:$0xff]  ;;  %v110_v39 = vld [vmem:[%s1171_s1 + $0x290] sm:$0xff]  ;;  %v111_v40 = vld [vmem:[%s1171_s1 + $0x298] sm:$0xff] }
  0x19   :  { %678 = vmatpush3.bf16.msra.mxu0 %v677_v10  ;;  %v21_v41 = vld [vmem:[%s1170_s0] sm:$0xff]  ;;  %v721_v42 = vpack.c.bf16 %v93_v38, %v92_v37  ;;  %v23_v43 = vld [vmem:[%s1170_s0 + $0x10] sm:$0xff]  ;;  %v723_v45 = vpack.c.bf16 %v111_v40, %v110_v39  ;;  %v95_v46 = vld [vmem:[%s1171_s1 + $0x218] sm:$0xff] }
  0x1a   :  { %680 = vmatprep.subr.bf16.mxu0 %v679_v14  ;;  %v94_v44 = vld [vmem:[%s1171_s1 + $0x210] sm:$0xff]  ;;  %v112_v47 = vld [vmem:[%s1171_s1 + $0x2a0] sm:$0xff]  ;;  %v113_v48 = vld [vmem:[%s1171_s1 + $0x2a8] sm:$0xff] }
  0x1b   :  { %710 = vmatpush3.bf16.msra.mxu1 %v709_v13  ;;  %v26_v49 = vld [vmem:[%s1170_s0 + $0x28] sm:$0xff]  ;;  %v124_v51 = vld [vmem:[%s1171_s1 + $0x300] sm:$0xff] }
  0x1c   :  { %712 = vmatprep.subr.bf16.mxu1 %v711_v18  ;;  %v125_v52 = vld [vmem:[%s1171_s1 + $0x308] sm:$0xff] }
  0x1d   :  { %682 = vmatpush3.bf16.msra.mxu0 %v681_v24  ;;  %v752_v53 = vpack.c.bf16 %v125_v52, %v124_v51 }
  0x1e   :  { %684 = vmatprep.subr.bf16.mxu0 %v683_v26 }
  0x1f   :  { %714 = vmatpush3.bf16.msra.mxu1 %v713_v25 }
  0x20   :  { %716 = vmatprep.subr.bf16.mxu1 %v715_v30 }
  0x21   :  { %686 = vmatpush3.bf16.msra.mxu0 %v685_v34 }
  0x22   :  { %720 = vmatprep.subr.bf16.mxu0 %v719_v36 }
  0x23   :  { %718 = vmatpush3.bf16.msra.mxu1 %v717_v35 }
  0x24   :  { %751 = vmatprep.subr.bf16.mxu1 %v788_v50  ;;  %202 = vmatmul.mubr.f32.vlgmr.msra.gmra.mrb[0].mxu0 %v21_v41 }
  0x25   :  { %10 = vsyncpa [#allocation3], 0  ;;  %722 = vmatpush3.bf16.msra.mxu0 %v721_v42  ;;  %v725_v54 = vpack.c.bf16 %v95_v46, %v94_v44  ;;  %v727_v55 = vpack.c.bf16 %v113_v48, %v112_v47  ;;  %v96_v56 = vld [vmem:[%s1171_s1 + $0x220] sm:$0xff]  ;;  %v97_v57 = vld [vmem:[%s1171_s1 + $0x228] sm:$0xff]  ;;  %341 = vmatprep.mubr.f32.mxu0 %v26_v49  ;;  %vm789_vm0 = vmmov 0   ;;  %v790_v60 = vmov 0.0  }
  0x26   :  { %272 = vmatmul.mubr.f32.vlgmr.msra.gmra.mrb[0].mxu1 %v23_v43  ;;  %724 = vmatprep.subr.bf16.mxu0 %v723_v45  ;;  %v114_v58 = vld [vmem:[%s1171_s1 + $0x2b0] sm:$0xff]  ;;  %v115_v59 = vld [vmem:[%s1171_s1 + $0x2b8] sm:$0xff]  ;;  %vm133_vm1 = vcmask 130048   ;;  %v729_v62 = vpack.c.bf16 %v97_v57, %v96_v56  ;;  %v116_v2 = vld [vmem:[%s1171_s1 + $0x2c0] sm:$0xff]  ;;  %vm429_vm2 = vcmask 261120   ;;  %vm504_vm3 = vcmask 80896  }
  0x27   :  { %753 = vmatpush3.bf16.msra.mxu1 %v752_v53  ;;  %641 = vmatprep.mubr.msk.f32.mxu1 %vm789_vm0, %v790_v60  ;;  %v27_v61 = vld [vmem:[%s1170_s0 + $0x30] sm:$0xff]  ;;  %v731_v63 = vpack.c.bf16 %v115_v59, %v114_v58  ;;  %v99_v1 = vld [vmem:[%s1171_s1 + $0x238] sm:$0xff]  ;;  %v117_v3 = vld [vmem:[%s1171_s1 + $0x2c8] sm:$0xff] }
  0x28   :  { %754 = vmatprep.subr.bf16.mxu1 %v788_v50  ;;  %v98_v0 = vld [vmem:[%s1171_s1 + $0x230] sm:$0xff]  ;;  %v735_v5 = vpack.c.bf16 %v117_v3, %v116_v2  ;;  %v100_v6 = vld [vmem:[%s1171_s1 + $0x240] sm:$0xff]  ;;  %v101_v7 = vld [vmem:[%s1171_s1 + $0x248] sm:$0xff] }
  0x29   :  { %726 = vmatpush3.bf16.msra.mxu0 %v725_v54  ;;  %v733_v4 = vpack.c.bf16 %v99_v1, %v98_v0  ;;  %v118_v8 = vld [vmem:[%s1171_s1 + $0x2d0] sm:$0xff]  ;;  %v119_v9 = vld [vmem:[%s1171_s1 + $0x2d8] sm:$0xff]  ;;  %v737_v10 = vpack.c.bf16 %v101_v7, %v100_v6  ;;  %v120_v14 = vld [vmem:[%s1171_s1 + $0x2e0] sm:$0xff] }
  0x2a   :  { %728 = vmatprep.subr.bf16.mxu0 %v727_v55  ;;  %642 = vmatmul.mubr.msk.f32.vlgmr.msra.gmra.mrb[2].mxu1 %vm133_vm1, %v27_v61  ;;  %v739_v11 = vpack.c.bf16 %v119_v9, %v118_v8  ;;  %v102_v12 = vld [vmem:[%s1171_s1 + $0x250] sm:$0xff]  ;;  %v103_v13 = vld [vmem:[%s1171_s1 + $0x258] sm:$0xff]  ;;  %v121_v15 = vld [vmem:[%s1171_s1 + $0x2e8] sm:$0xff] }
  0x2b   :  { %652 = vmatprep.mubr.msk.f32.mxu1 %vm789_vm0, %v790_v60  ;;  %v741_v16 = vpack.c.bf16 %v103_v13, %v102_v12  ;;  %v743_v17 = vpack.c.bf16 %v121_v15, %v120_v14  ;;  %v104_v18 = vld [vmem:[%s1171_s1 + $0x260] sm:$0xff]  ;;  %v105_v19 = vld [vmem:[%s1171_s1 + $0x268] sm:$0xff]  ;;  %v122_v20 = vld [vmem:[%s1171_s1 + $0x2f0] sm:$0xff] }
  0x2c   :  { %v123_v21 = vld [vmem:[%s1171_s1 + $0x2f8] sm:$0xff]  ;;  %v745_v22 = vpack.c.bf16 %v105_v19, %v104_v18  ;;  %v106_v24 = vld [vmem:[%s1171_s1 + $0x270] sm:$0xff]  ;;  %v25_v27 = vld [vmem:[%s1170_s0 + $0x20] sm:$0xff] }
  0x2d   :  { %730 = vmatpush3.bf16.msra.mxu0 %v729_v62  ;;  %v747_v23 = vpack.c.bf16 %v123_v21, %v122_v20  ;;  %v107_v25 = vld [vmem:[%s1171_s1 + $0x278] sm:$0xff]  ;;  %v418_v28 = vld [vmem:[%s1173_s3] sm:$0xff]  ;;  %v419_v29 = vld [vmem:[%s1173_s3 + $0x8] sm:$0xff] }
  0x2e   :  { %732 = vmatprep.subr.bf16.mxu0 %v731_v63  ;;  %v749_v26 = vpack.c.bf16 %v107_v25, %v106_v24  ;;  %v755_v30 = vpack.c.bf16 %v419_v29, %v418_v28  ;;  %v420_v31 = vld [vmem:[%s1173_s3 + $0x10] sm:$0xff]  ;;  %v421_v32 = vld [vmem:[%s1173_s3 + $0x18] sm:$0xff]  ;;  %v520_v35 = vld [vmem:[%s1172_s2] ss:$0 sm:$0xff]  ;;  %s791_s2 = smov [#allocation2]  }
  0x2f   :  { %v758_v33 = vpack.c.bf16 %v421_v32, %v420_v31  ;;  %v522_v51 = vld [vmem:[%s1174_s4] ss:$0 sm:$0xff]  ;;  %s512_s12 = sshll.u32 %s791_s2, 4  ;;  %s513_s12 = int_to_ptr.vmem [resolvable:$true] %s512_s12 }
  0x30   :  { %756 = vmatpush3.bf16.msra.mxu1 %v755_v30  ;;  %s764_s13 = scalar_lea.vmem %s513_s12, 128  ;;  %p769_p1 = scmp.lt.s32.totalorder %s513_s12, %s513_s12 }
  0x31   :  { %734 = vmatpush3.bf16.msra.mxu0 %v733_v4  ;;  %757 = vmatprep.subr.bf16.mxu1 %v788_v50  ;;  %p765_p0 = scmp.ne.s32.totalorder %s513_s12, %s764_s13  ;;  %p770_p2 = scmp.lt.s32.totalorder %s764_s13, %s764_s13 }
  0x32   :  { %736 = vmatprep.subr.bf16.mxu0 %v735_v5 }
  0x33   :  { %p771_p3 = por %p770_p2, %p769_p1 }
  0x34   :  { %759 = vmatpush3.bf16.msra.mxu1 %v758_v33 }
  0x35   :  { %738 = vmatpush3.bf16.msra.mxu0 %v737_v10  ;;  %p772_p4 = pnand %p771_p3, %p765_p0 }
  0x36   :  { %740 = vmatprep.subr.bf16.mxu0 %v739_v11 }
  0x39   :  { %742 = vmatpush3.bf16.msra.mxu0 %v741_v16 }
  0x3a   :  { %744 = vmatprep.subr.bf16.mxu0 %v743_v17 }
  0x3d   :  { %746 = vmatpush3.bf16.msra.mxu0 %v745_v22 }
  0x3e   :  { %748 = vmatprep.subr.bf16.mxu0 %v747_v23 }
  0x41   :  { %750 = vmatpush3.bf16.msra.mxu0 %v749_v26 }
  0x44   :  { %342 = vmatmul.mubr.f32.vlgmr.msra.gmra.mrb[2].mxu0 %v25_v27 }
  0xf7   :  { %v556_v34 = vpop.f32.mrb[0].mxu0 }
  0xf8   :  { %v557_v36 = vpop.f32.mrb[1].mxu0 }
  0xf9   :  { %v591_v37 = vpop.f32.mrb[0].mxu1  ;;  %v558_v38 = vadd.f32 %v557_v36, %v556_v34 }
  0xfa   :  { %v592_v39 = vpop.f32.mrb[1].mxu1 }
  0xfb   :  { %v593_v40 = vadd.f32 %v592_v39, %v591_v37  ;;  %v204_v41 = vadd.f32 %v558_v38, %v520_v35 }
  0xfd   :  { %v274_v42 = vadd.f32 %v593_v40, %v204_v41  ;;  %v413_v43 = vpop.f32.mrb[2].mxu1 }
  0xfe   :  { %v643_v44 = vpop.f32.mrb[3].mxu1 }
 0x117   :  { %v626_v45 = vpop.f32.mrb[2].mxu0 }
 0x118   :  { %v627_v46 = vpop.f32.mrb[3].mxu0 }
 0x119   :  { %v628_v47 = vadd.f32 %v627_v46, %v626_v45 }
 0x11b   :  { %v344_v48 = vadd.f32 %v628_v47, %v274_v42 }
 0x11d   :  { %v414_v49 = vadd.f32 %v413_v43, %v344_v48 }
 0x11f   :  { %v417_v50 = vmax.f32 %v414_v49, 0.0 }
 0x121   :  { %653 = vmatmul.mubr.msk.f32.vlgmr.msra.gmra.mrb[4].mxu1 %vm429_vm2, %v417_v50 }
 0x1f4   :  { %v499_v52 = vpop.f32.mrb[4].mxu1 }
 0x1f5   :  { %v500_v53 = vadd.f32 %v522_v51, %v499_v52  ;;  %v654_v54 = vpop.f32.mrb[5].mxu1 }
 0x1f7   :  { %v503_v55 = vmax.f32 %v500_v53, 0.0 }
 0x1f9   :  { %505 = vst.msk [vmem:[#allocation2] sm:$0xff] %vm504_vm3, %v503_v55 }
 0x1fa   :  { %775 = shalt.err (!%p772_p4)
}
 0x1fb   :  { %s776_s4 = scalar_lea.hbm %s1175_s5, 128 }
 0x1fc   :  { %p777_p5 = scmp.ne.s32.totalorder %s1175_s5, %s776_s4  ;;  %p780_p6 = scmp.lt.u32.totalorder %s776_s4, %s1175_s5 }
 0x1fe   :  { %p782_p7 = pnand %p780_p6, %p777_p5 }
 0x200   :  { %785 = shalt.err (!%p782_p7)
}
 0x201   :  { %515 = dma.vmem_to_hbm [thread:$0]  %s513_s12, 128, %s1175_s5, [#allocation3]  }
 0x202   :  { %786 = dma.done.wait [#allocation3], 128  }
 0x203   :  { %787 = vsyncadd [#allocation3], 4294967168 }
 0x204   :  { %519 = vsyncpa [#allocation3], 1 }

</bundles_post_ra>
